<compile_context>
chip_gen: v6e
topology: v6e:2x2x1
jax: 0.10.0
libtpu: 0.0.40
codegen_flags: <defaults>
</compile_context>

<pallas_src>
import jax
import jax.numpy as jnp
from jax.experimental import pallas as pl
from jax.experimental.pallas import tpu as pltpu


# --------------------------------------------------------------------------- #
# tiling helpers
# --------------------------------------------------------------------------- #
def _round_up(x, m):
    return (x + m - 1) // m * m


def _sublane_multiple(dtype):
    # native sublane packing: 8 rows for 32-bit, 16 for 16-bit, 32 for 8-bit
    return max(8, 32 // jnp.dtype(dtype).itemsize)


def _vmem_budget():
    """(double-buffered block-byte budget, scoped vmem limit) per generation."""
    try:
        cap = pltpu.get_tpu_info().vmem_capacity_bytes  # 128 MiB v5e/v6e, 64 MiB v7x
    except Exception:
        cap = 64 * 1024 * 1024                          # assume the smallest (v7x)
    vmem_limit = min(cap // 2, 32 * 1024 * 1024)    # raises v5e's 16 MiB scoped
                                                    # default, <= half of physical
    block_budget = min(8 * 1024 * 1024, cap // 8)   # a few MiB already saturates
                                                    # the HBM pipeline; leave room
                                                    # for temps + compiler scratch
    return block_budget, vmem_limit


def _pick_row_tile(n_rows, d, h_dtype, block_budget):
    """Rows of h per grid step for the matvec pass."""
    d_pad = _round_up(d, 128)                       # lanes are padded in VMEM/HBM
    h_isz = jnp.dtype(h_dtype).itemsize
    # 2x: double-buffered h block + f32 score block; +8: per-row temp headroom
    per_row = 2 * (d_pad * h_isz + 4) + 8
    r = max(1, block_budget // per_row)
    if r >= n_rows:
        return n_rows
    # keep >= ~8 grid steps: pipeline overlap + v7x megacore sharding
    r = min(r, _round_up(pl.cdiv(n_rows, 8), 128))
    r = max(128, (r // 128) * 128)   # (1, R) score block needs R % 128 when tiled
    return n_rows if r >= n_rows else r


def _pick_batch_tile(b, s, mask_dtype, out_dtype, block_budget):
    """Batch rows per grid step for the masked-softmax pass."""
    s_pad = _round_up(s, 128)
    m_isz = jnp.dtype(mask_dtype).itemsize
    o_isz = jnp.dtype(out_dtype).itemsize
    # 2x double-buffered (f32 scores + mask + out) blocks + ~6 f32 temporaries
    per_b = 2 * s_pad * (4 + m_isz + o_isz) + 6 * s_pad * 4
    tb = max(1, block_budget // per_b)
    if tb >= b:
        return b
    tb = min(tb, pl.cdiv(b, 8))                     # keep >= ~8 grid steps
    mult = max(8, _sublane_multiple(mask_dtype), _sublane_multiple(out_dtype))
    tb = max(mult, (tb // mult) * mult)             # 2-D block leading-dim rule
    return b if tb >= b else tb


# --------------------------------------------------------------------------- #
# kernels
# --------------------------------------------------------------------------- #
def _matvec_kernel(h_ref, w_ref, o_ref):
    # similarities = uw(h): contract D on the MXU, (1, D) x (R, D)^T -> (1, R),
    # f32 accumulation; h is consumed in its native dtype (no f32 upcast).
    o_ref[...] = jax.lax.dot_general(
        w_ref[...], h_ref[...],
        dimension_numbers=(((1,), (1,)), ((), ())),
        preferred_element_type=jnp.float32,
    ).astype(o_ref.dtype)


def _masked_softmax_kernel(s_ref, m_ref, o_ref):
    # allennlp masked_softmax, algebraically fused:
    #   alpha = e*m / (sum(e*m) + 1e-13*sum(e)),  e = exp(v - max(v)),  v = s*m
    v = s_ref[...]                                  # [TB, S] f32 similarities
    m = m_ref[...].astype(jnp.float32)              # [TB, S]
    v = v * m
    v_max = jnp.max(v, axis=-1, keepdims=True)
    e = jnp.exp(v - v_max)                          # EUP
    em = e * m
    s_e = jnp.sum(e, axis=-1, keepdims=True)
    s_em = jnp.sum(em, axis=-1, keepdims=True)
    denom = s_em + 1e-13 * s_e                      # [TB, 1]
    inv = pl.reciprocal(denom, approx=True)         # narrow EUP reciprocal
    inv = inv * (2.0 - denom * inv)                 # 1 Newton step: <1e-7 rel err
    o_ref[...] = (em * inv).astype(o_ref.dtype)


# --------------------------------------------------------------------------- #
# wrapper
# --------------------------------------------------------------------------- #
def dot_product_attention_in_htt(h, uw_weight, mask=None, *, softmax=True):
    """Pallas implementation of DotProductAttentionInHtt.forward(h, mask).

    h:         [B, S, D] activations (f32 or bf16; bf16 recommended)
    uw_weight: [1, D]    weight of nn.Linear(D, 1, bias=False)
    mask:      [B, S]    0/1 mask (float/int; bool is cast on the host)
    returns    [B, S] in h.dtype: masked-softmax weights (or raw similarities
               if softmax=False)
    """
    B, S, D = h.shape
    assert uw_weight.shape == (1, D)

    block_budget, vmem_limit = _vmem_budget()
    cparams = pltpu.CompilerParams(
        dimension_semantics=("parallel",),   # megacore sharding on v7x
        vmem_limit_bytes=vmem_limit,
    )

    # ---- pass 1: similarities = uw(h), MXU matvec over the big h stream ----
    n_rows = B * S
    r = _pick_row_tile(n_rows, D, h.dtype, block_budget)
    w = uw_weight.astype(h.dtype)            # tiny; match the MXU operand dtype
    scores_dtype = jnp.float32 if softmax else h.dtype
    scores = pl.pallas_call(
        _matvec_kernel,
        out_shape=jax.ShapeDtypeStruct((1, n_rows), scores_dtype),
        grid_spec=pltpu.PrefetchScalarGridSpec(
            num_scalar_prefetch=0,
            grid=(pl.cdiv(n_rows, r),),
            in_specs=[
                pl.BlockSpec((r, D), lambda i: (i, 0)),   # h rows (streamed)
                pl.BlockSpec((1, D), lambda i: (0, 0)),   # uw weight (resident)
            ],
            out_specs=pl.BlockSpec((1, r), lambda i: (0, i)),  # lane-dense scores
        ),
        compiler_params=cparams,
    )(h.reshape(n_rows, D), w)
    similarities = scores.reshape(B, S)      # free metadata reshape in XLA
    if not softmax:
        return similarities

    # ---- pass 2: alpha = masked_softmax(similarities, mask), O(B*S) bytes ----
    assert mask is not None and mask.shape == (B, S)
    if mask.dtype == jnp.bool_:
        mask = mask.astype(jnp.float32)      # tiny host-side cast for bool masks
    tb = _pick_batch_tile(B, S, mask.dtype, h.dtype, block_budget)
    return pl.pallas_call(
        _masked_softmax_kernel,
        out_shape=jax.ShapeDtypeStruct((B, S), h.dtype),
        grid_spec=pltpu.PrefetchScalarGridSpec(
            num_scalar_prefetch=0,
            grid=(pl.cdiv(B, tb),),
            in_specs=[
                pl.BlockSpec((tb, S), lambda i: (i, 0)),  # similarities (f32)
                pl.BlockSpec((tb, S), lambda i: (i, 0)),  # mask
            ],
            out_specs=pl.BlockSpec((tb, S), lambda i: (i, 0)),
        ),
        compiler_params=cparams,
    )(similarities, mask)


# --------------------------------------------------------------------------- #
# reference + demo
# --------------------------------------------------------------------------- #
def _reference(h, uw_weight, mask, softmax=True):
    """Pure-JAX mirror of DotProductAttentionInHtt.forward (f32 math)."""
    sims = jnp.matmul(h.astype(jnp.float32),
                      uw_weight.astype(jnp.float32).T)[..., 0]   # [B, S]
    if not softmax:
        return sims
    m = mask.astype(jnp.float32)
    sm = jax.nn.softmax(sims * m, axis=-1)
    r = sm * m
    return r / (jnp.sum(r, axis=-1, keepdims=True) + 1e-13)


if __name__ == "__main__":
    key = jax.random.PRNGKey(0)
    k_h, k_w, k_m = jax.random.split(key, 3)

    B, S, D = 2, 8, 32   # batch, sequence, hidden (in_features)
    h = jax.random.normal(k_h, (B, S, D), dtype=jnp.float32)
    uw_weight = jax.random.normal(k_w, (1, D), dtype=jnp.float32) * 0.1
    # binary mask, at least one unmasked position per row
    mask = (jax.random.uniform(k_m, (B, S)) > 0.4).astype(jnp.float32)
    mask = mask.at[:, 0].set(1.0)

    ref = _reference(h, uw_weight, mask)

    # f32 path (MXU f32 matmul is multi-pass / near-f32 accurate)
    alpha = jax.block_until_ready(dot_product_attention_in_htt(h, uw_weight, mask))
    assert alpha.shape == (B, S) and alpha.dtype == h.dtype
    assert jnp.allclose(alpha.astype(jnp.float32), ref, atol=1e-4, rtol=1e-4)

    # softmax=False path (raw similarities, h.dtype like the PyTorch module)
    sims = jax.block_until_ready(
        dot_product_attention_in_htt(h, uw_weight, mask, softmax=False))
    sims_ref = _reference(h, uw_weight, mask, softmax=False)
    assert sims.shape == (B, S)
    assert jnp.allclose(sims.astype(jnp.float32), sims_ref, atol=1e-4, rtol=1e-4)

    # bf16 h path (recommended production dtype: halves HBM traffic of h;
    # consumed natively by the MXU with f32 accumulation)
    alpha_bf16 = jax.block_until_ready(
        dot_product_attention_in_htt(h.astype(jnp.bfloat16), uw_weight, mask))
    assert alpha_bf16.dtype == jnp.bfloat16
    assert jnp.allclose(alpha_bf16.astype(jnp.float32), ref, atol=5e-2, rtol=5e-2)

    print("KERNEL_OK")
</pallas_src>

<mosaic_0001>
module attributes {stable_mosaic.version = 11 : i64} {
  func.func @_matvec_kernel(%arg0: i32, %arg1: memref<16x32xf32, #tpu.memory_space<vmem>>, %arg2: memref<1x32xf32, #tpu.memory_space<vmem>>, %arg3: memref<1x16xf32, #tpu.memory_space<vmem>>) attributes {dimension_semantics = [#tpu.dimension_semantics<parallel>], iteration_bounds = array<i64: 1>, scalar_prefetch = 0 : i64, scratch_operands = 0 : i64, tpu.core_type = #tpu.core_type<tc>, window_params = [{transform_indices = @transform_0, window_bounds = array<i64: 16, 32>}, {pipeline_mode = #tpu.pipeline_mode<synchronous>, transform_indices = @transform_1, window_bounds = array<i64: 1, 32>}, {transform_indices = @transform_2, window_bounds = array<i64: 1, 16>}]} {
    %c0 = arith.constant 0 : index
    %c0_0 = arith.constant 0 : index
    %0 = vector.load %arg2[%c0, %c0_0] : memref<1x32xf32, #tpu.memory_space<vmem>>, vector<1x32xf32>
    %c0_1 = arith.constant 0 : index
    %c0_2 = arith.constant 0 : index
    %1 = vector.load %arg1[%c0_1, %c0_2] : memref<16x32xf32, #tpu.memory_space<vmem>>, vector<16x32xf32>
    %cst = arith.constant dense<0.000000e+00> : vector<1x16xf32>
    %2 = tpu.matmul %0, %1, %cst {dimension_numbers = #tpu.dot_dimension_numbers<[1], [1], [0], [0], [0, 0, 1, 0], [], []>} : vector<1x32xf32>, vector<16x32xf32>, vector<1x16xf32> -> vector<1x16xf32>
    %c0_3 = arith.constant 0 : index
    %c0_4 = arith.constant 0 : index
    %3 = vector.load %arg3[%c0_3, %c0_4] : memref<1x16xf32, #tpu.memory_space<vmem>>, vector<1x16xf32>
    tpu.vector_store %arg3[%c0_3, %c0_4], %2 {strides = array<i32>} : memref<1x16xf32, #tpu.memory_space<vmem>>, vector<1x16xf32>,
    return
  }
  func.func @transform_0(%arg0: i32) -> (i32, i32) {
    %c0_i32 = arith.constant 0 : i32
    %c0_i32_0 = arith.constant 0 : i32
    return %arg0, %c0_i32 : i32, i32
  }
  func.func @transform_1(%arg0: i32) -> (i32, i32) {
    %c0_i32 = arith.constant 0 : i32
    %c0_i32_0 = arith.constant 0 : i32
    %c0_i32_1 = arith.constant 0 : i32
    return %c0_i32, %c0_i32_0 : i32, i32
  }
  func.func @transform_2(%arg0: i32) -> (i32, i32) {
    %c0_i32 = arith.constant 0 : i32
    %c0_i32_0 = arith.constant 0 : i32
    return %c0_i32, %arg0 : i32, i32
  }
}

</mosaic_0001>

<bundles_post_ra>
// kernel: tpu_custom_call.1
= control target key start
LH: loop header
LB: loop body
LE: loop exit
PB: predicated region body
PF: predicated region fallthrough
CT: control target
= control target key end

     0   :  { %7 = vsyncpa [#allocation3], 0  ;;  %s219_s0 = inlined_call_operand.hbm [shape: f32[16,32], index: 0, kind: input, shape index: {}]   ;;  %s220_s1 = inlined_call_operand.vmem [shape: f32[1,32], index: 1, kind: input, shape index: {}]   ;;  %s221_s2 = inlined_call_operand.hbm [shape: f32[1,16], index: 2, kind: output, shape index: {}]  }
   0x1   :  { %8 = vsyncpa [#allocation4], 0  ;;  %s189_s9 = smov [#allocation2]  }
   0x2   :  { %s14_s10 = sshll.u32 %s189_s9, 4  ;;  %s15_s10 = int_to_ptr.vmem [resolvable:$true] %s14_s10 }
   0x3   :  { %s153_s11 = scalar_lea.vmem %s15_s10, 256  ;;  %p158_p1 = scmp.lt.s32.totalorder %s15_s10, %s15_s10 }
   0x4   :  { %p154_p0 = scmp.ne.s32.totalorder %s15_s10, %s153_s11  ;;  %p159_p2 = scmp.lt.s32.totalorder %s153_s11, %s153_s11 }
   0x6   :  { %p160_p3 = por %p159_p2, %p158_p1 }
   0x8   :  { %p161_p4 = pnand %p160_p3, %p154_p0 }
   0xa   :  { %164 = shalt.err (!%p161_p4)
}
   0xb   :  { %s190_s12 = smov 128   ;;  %s191_s13 = smov 8  }
   0xc   :  { %20 = dma.hbm_to_vmem [thread:$0]  %s219_s0, 256, %s15_s10, [#allocation3], %s190_s12, %s190_s12, %s191_s13  }
   0xd   :  { %185 = dma.done.wait [#allocation3], 256  }
   0xe   :  { %186 = vsyncadd [#allocation3], 4294967040  ;;  %v192_v0 = vmov 0.0   ;;  %vm193_vm0 = vmmov 0   ;;  %vm29_vm1 = vcmask 261120   ;;  %v28_v1 = vld [vmem:[#allocation2 + $0x8] sm:$0xff] }
   0xf   :  { %132 = vmatprep.subr.mxu0 %v192_v0  ;;  %136 = vmatprep.mubr.msk.f32.mxu0 %vm193_vm0, %v192_v0  ;;  %v27_v2 = vld [vmem:[#allocation2] sm:$0xff]  ;;  %s194_s18 = smov [#allocation5]   ;;  %vm109_vm2 = vcmask 122880  }
  0x10   :  { %133 = vmatpush3.xpose.msk.msra.mxu0 %vm29_vm1, %v28_v1  ;;  %v26_v3 = vld [vmem:[%s220_s1] sm:$0x1]  ;;  %s117_s19 = sshll.u32 %s194_s18, 4  ;;  %s118_s19 = int_to_ptr.vmem [resolvable:$true] %s117_s19 }
  0x11   :  { %134 = vmatprep.subr.mxu0 %v192_v0  ;;  %s165_s0 = scalar_lea.vmem %s118_s19, 16  ;;  %s169_s20 = scalar_lea.vmem %s118_s19, 32 }
  0x12   :  { %p166_p5 = scmp.ne.s32.totalorder %s118_s19, %s165_s0  ;;  %p170_p6 = scmp.lt.s32.totalorder %s118_s19, %s118_s19 }
  0x13   :  { %p171_p7 = scmp.lt.s32.totalorder %s169_s20, %s165_s0 }
  0x14   :  { %135 = vmatpush3.xpose.msk.msra.mxu0 %vm29_vm1, %v27_v2 }
  0x15   :  { %p172_p8 = por %p171_p7, %p170_p6 }
  0x17   :  { %137 = vmatmul.mubr.msk.f32.vlgmr.msra.gmra.mxu0 %vm29_vm1, %v26_v3  ;;  %p173_p9 = pnand %p172_p8, %p166_p5 }
  0xd7   :  { %v105_v4 = vpop.f32.mrf.mxu0 }
  0xd8   :  { %110 = vst.msk [vmem:[#allocation5] sm:$0x1] %vm109_vm2, %v105_v4 }
  0xd9   :  { %v138_v5 = vpop.f32.mrf.mxu0 }
  0xda   :  { %176 = shalt.err (!%p173_p9)
}
  0xdb   :  { %120 = dma.vmem_to_hbm [thread:$0]  %s118_s19, 16, %s221_s2, [#allocation4]  }
  0xdc   :  { %187 = dma.done.wait [#allocation4], 16  }
  0xdd   :  { %188 = vsyncadd [#allocation4], 4294967280 }
  0xde   :  { %124 = vsyncpa [#allocation3], 1 }
  0xdf   :  { %125 = vsyncpa [#allocation4], 1 }

</bundles_post_ra>
